<compile_context>
chip_gen: v6e
topology: v6e:2x2x1
jax: 0.10.0
libtpu: 0.0.40
codegen_flags: <defaults>
</compile_context>

<pallas_src>
import functools

import jax
import jax.numpy as jnp
from jax import lax
from jax.experimental import pallas as pl
from jax.experimental.pallas import tpu as pltpu

LANE = 128
SUB = 8
BN_EPS = 1e-5


def _round_up(n, m):
    return ((n + m - 1) // m) * m


# ---------------------------------------------------------------------------
# Parameter packing: one lane-dense f32 slab [rows, C] holding everything.
#   rows 0..7  : row 0 gamma, row 1 beta, row 2 b1, row 3 b2
#   w1 block   : [i_r, C]   cols :hidden      = W1           (i_r = round8(input))
#   w2 block   : [C,  C]    [:hidden,:hidden] = W2
#   w3h block  : [o_r, C]   [:out,:hidden]    = W3[:hidden].T  (fc3, transposed)
#   w3a block  : [o_r, C]   [:out,:att]       = W3[hidden:].T
#   b3 block   : [o_r, C]   column 0          = b3
# All block offsets are multiples of 8 sublanes -> aligned static ref slices.
# ---------------------------------------------------------------------------
def pack_params(raw, input_dim, hidden_dim, attention_dim, out_dim):
    c = _round_up(max(input_dim, hidden_dim, attention_dim), LANE)
    i_r = _round_up(input_dim, SUB)
    o_r = _round_up(out_dim, SUB)
    w1_off = SUB
    w2_off = w1_off + i_r
    w3h_off = w2_off + c
    w3a_off = w3h_off + o_r
    b3_off = w3a_off + o_r
    rows = b3_off + o_r

    slab = jnp.zeros((rows, c), jnp.float32)
    slab = slab.at[0, :input_dim].set(raw["gamma"])
    slab = slab.at[1, :input_dim].set(raw["beta"])
    slab = slab.at[2, :hidden_dim].set(raw["b1"])
    slab = slab.at[3, :hidden_dim].set(raw["b2"])
    slab = slab.at[w1_off:w1_off + input_dim, :hidden_dim].set(raw["w1"])
    slab = slab.at[w2_off:w2_off + hidden_dim, :hidden_dim].set(raw["w2"])
    slab = slab.at[w3h_off:w3h_off + out_dim, :hidden_dim].set(
        raw["w3"][:hidden_dim].T)
    slab = slab.at[w3a_off:w3a_off + out_dim, :attention_dim].set(
        raw["w3"][hidden_dim:].T)
    slab = slab.at[b3_off:b3_off + out_dim, 0].set(raw["b3"])

    meta = dict(
        input_dim=input_dim, hidden_dim=hidden_dim, attention_dim=attention_dim,
        out_dim=out_dim, c=c, i_r=i_r, o_r=o_r,
        w1_off=w1_off, w2_off=w2_off, w3h_off=w3h_off, w3a_off=w3a_off,
        b3_off=b3_off, rows=rows,
    )
    # gamma/beta kept separately so the tiled path can fold them into the hoisted
    # BN statistics host-side.
    return {"slab": slab, "gamma": raw["gamma"], "beta": raw["beta"], "meta": meta}


# ---------------------------------------------------------------------------
# Shared MLP tail: fc1 -> ReLU -> fc2 -> ReLU -> transposed fc3.
# Returns out^T of shape [o_r, rows]  (row j = output feature j).
# ---------------------------------------------------------------------------
def _mlp_tail_T(xn, x2f, p_ref, m):
    rows = xn.shape[0]
    c, i_r, o_r = m["c"], m["i_r"], m["o_r"]
    att = m["attention_dim"]
    vec = p_ref[0:SUB, :]                                      # one (8,128) tile
    b1 = vec[2:3, :]
    b2 = vec[3:4, :]

    if i_r != m["input_dim"]:
        xn = jnp.concatenate(
            [xn, jnp.zeros((rows, i_r - m["input_dim"]), jnp.float32)], axis=-1)
    w1 = p_ref[m["w1_off"]:m["w1_off"] + i_r, :]               # [i_r, C]
    h1 = jnp.maximum(
        jnp.dot(xn, w1, preferred_element_type=jnp.float32) + b1, 0.0)  # [rows, C]

    w2 = p_ref[m["w2_off"]:m["w2_off"] + c, :]                 # [C, C]
    h2 = jnp.maximum(
        jnp.dot(h1, w2, preferred_element_type=jnp.float32) + b2, 0.0)  # [rows, C]

    # fc3 computed transposed:  out^T = W3h^T @ h2^T + W3a^T @ x2^T + b3.
    # Both dots contract the last dim of each operand (q @ k^T form), so no
    # activation transpose or lane-ragged concat is materialized and the result
    # is a narrow lane-dense [o_r, rows] block.
    dn = (((1,), (1,)), ((), ()))
    w3h_t = p_ref[m["w3h_off"]:m["w3h_off"] + o_r, :]          # [o_r, C]
    w3a_t = p_ref[m["w3a_off"]:m["w3a_off"] + o_r, :]          # [o_r, C]
    b3_col = p_ref[m["b3_off"]:m["b3_off"] + o_r, :][:, 0:1]   # [o_r, 1]
    out_t = lax.dot_general(w3h_t, h2, dn, preferred_element_type=jnp.float32)
    out_t = out_t + lax.dot_general(
        w3a_t[:, :att], x2f, dn, preferred_element_type=jnp.float32)
    return out_t + b3_col


# --- small-batch kernel: whole batch in one block, BN stats computed in-kernel ---
def _kernel_single(x1_ref, x2_ref, p_ref, out_ref, *, m):
    din = m["input_dim"]
    x1 = x1_ref[...].astype(jnp.float32)
    vec = p_ref[0:SUB, :]
    gamma = vec[0:1, :din]
    beta = vec[1:2, :din]

    # Two-pass batch statistics (biased variance == PyTorch training-mode forward).
    mean = jnp.mean(x1, axis=0, keepdims=True)
    xc = x1 - mean
    var = jnp.mean(xc * xc, axis=0, keepdims=True)
    xn = xc * (lax.rsqrt(var + BN_EPS) * gamma) + beta

    out_ref[...] = _mlp_tail_T(
        xn, x2_ref[...].astype(jnp.float32), p_ref, m).astype(out_ref.dtype)


# --- batch-tiled kernel: BN pre-folded into (scale, shift), weights resident ---
def _kernel_tiled(x1_ref, x2_ref, dyn_ref, p_ref, out_ref, *, m):
    din = m["input_dim"]
    x1 = x1_ref[...].astype(jnp.float32)
    dyn = dyn_ref[...]
    xn = x1 * dyn[0:1, :din] + dyn[1:2, :din]
    out_ref[...] = _mlp_tail_T(
        xn, x2_ref[...].astype(jnp.float32), p_ref, m).astype(out_ref.dtype)


# ---------------------------------------------------------------------------
# Wrapper
# ---------------------------------------------------------------------------
def attention_mlp_forward(x1, x2, packed, *, block_rows=1024):
    m = packed["meta"]
    slab = packed["slab"]
    b = x1.shape[0]
    c, o_r, dout, din = m["c"], m["o_r"], m["out_dim"], m["input_dim"]
    vmem = pl.BlockSpec(memory_space=pltpu.MemorySpace.VMEM)

    if b <= block_rows:
        # Single grid point: latency/launch bound at these sizes; BN statistics in
        # kernel (exact PyTorch training-mode semantics).
        out_t = pl.pallas_call(
            functools.partial(_kernel_single, m=m),
            out_shape=jax.ShapeDtypeStruct((o_r, b), jnp.float32),
            in_specs=[vmem, vmem, vmem],
            out_specs=vmem,
        )(x1, x2, slab)
        return out_t[:dout, :].T

    # Large batch: hoist full-batch BN statistics (two-pass variance, computed over
    # the real b rows so ragged-block garbage never enters the stats), fold
    # gamma/beta into one (scale, shift) pair, then tile the batch with a cdiv grid
    # (no padding copies; the ragged last block is masked on writeback).
    x1f = x1.astype(jnp.float32)
    mean = jnp.mean(x1f, axis=0, keepdims=True)
    var = jnp.mean((x1f - mean) ** 2, axis=0, keepdims=True)
    scale = lax.rsqrt(var + BN_EPS) * packed["gamma"]
    shift = packed["beta"] - mean * scale
    dyn = jnp.zeros((SUB, c), jnp.float32)
    dyn = dyn.at[0, :din].set(scale[0])
    dyn = dyn.at[1, :din].set(shift[0])

    grid = (pl.cdiv(b, block_rows),)
    out_t = pl.pallas_call(
        functools.partial(_kernel_tiled, m=m),
        out_shape=jax.ShapeDtypeStruct((o_r, b), jnp.float32),
        grid=grid,
        in_specs=[
            pl.BlockSpec((block_rows, x1.shape[1]), lambda i: (i, 0)),
            pl.BlockSpec((block_rows, x2.shape[1]), lambda i: (i, 0)),
            pl.BlockSpec((SUB, c), lambda i: (0, 0)),        # BN scale/shift, resident
            pl.BlockSpec((m["rows"], c), lambda i: (0, 0)),  # parameter slab, resident
        ],
        out_specs=pl.BlockSpec((o_r, block_rows), lambda i: (0, i)),
        compiler_params=pltpu.CompilerParams(dimension_semantics=("parallel",)),
    )(x1, x2, dyn, slab)
    return out_t[:dout, :].T


# ---------------------------------------------------------------------------
# Synthetic parameters + pure-JAX reference of the PyTorch forward
# ---------------------------------------------------------------------------
def make_params(key, input_dim, attention_dim, hidden_dim, out_dim):
    ks = jax.random.split(key, 6)
    s = 0.1
    return {
        "gamma": jnp.ones((input_dim,), jnp.float32),    # BatchNorm1d weight.fill_(1)
        "beta": jnp.zeros((input_dim,), jnp.float32),    # BatchNorm1d bias.fill_(0)
        "w1": s * jax.random.normal(ks[0], (input_dim, hidden_dim), jnp.float32),
        "b1": s * jax.random.normal(ks[1], (hidden_dim,), jnp.float32),
        "w2": s * jax.random.normal(ks[2], (hidden_dim, hidden_dim), jnp.float32),
        "b2": s * jax.random.normal(ks[3], (hidden_dim,), jnp.float32),
        "w3": s * jax.random.normal(
            ks[4], (hidden_dim + attention_dim, out_dim), jnp.float32),
        "b3": s * jax.random.normal(ks[5], (out_dim,), jnp.float32),
    }


def reference_forward(x1, x2, raw):
    mean = jnp.mean(x1, axis=0, keepdims=True)
    var = jnp.mean((x1 - mean) ** 2, axis=0, keepdims=True)
    xn = (x1 - mean) / jnp.sqrt(var + BN_EPS) * raw["gamma"] + raw["beta"]
    h1 = jax.nn.relu(xn @ raw["w1"] + raw["b1"])
    h2 = jax.nn.relu(h1 @ raw["w2"] + raw["b2"])
    h3 = jnp.concatenate([h2, x2], axis=1)
    return h3 @ raw["w3"] + raw["b3"]        # out_fn = identity (constrain_out=False)


if __name__ == "__main__":
    input_dim, attention_dim, hidden_dim, out_dim = 16, 8, 32, 4

    key = jax.random.PRNGKey(0)
    k1, k2, k3, k4, kp = jax.random.split(key, 5)
    raw = make_params(kp, input_dim, attention_dim, hidden_dim, out_dim)
    packed = pack_params(raw, input_dim, hidden_dim, attention_dim, out_dim)

    # Path 1: small batch -> single grid point, in-kernel BatchNorm statistics.
    B = 8
    x1 = jax.random.normal(k1, (B, input_dim), jnp.float32)
    x2 = jax.random.normal(k2, (B, attention_dim), jnp.float32)
    out = jax.block_until_ready(attention_mlp_forward(x1, x2, packed))
    ref = reference_forward(x1, x2, raw)
    assert out.shape == (B, out_dim)
    assert jnp.allclose(out, ref, atol=1e-4, rtol=1e-4), "small-batch mismatch"

    # Path 2: larger batch -> cdiv grid (ragged last block), resident weights,
    # hoisted + folded BN statistics, narrow transposed output.
    BL = 300
    x1l = jax.random.normal(k3, (BL, input_dim), jnp.float32)
    x2l = jax.random.normal(k4, (BL, attention_dim), jnp.float32)
    outl = jax.block_until_ready(
        attention_mlp_forward(x1l, x2l, packed, block_rows=128))
    refl = reference_forward(x1l, x2l, raw)
    assert outl.shape == (BL, out_dim)
    assert jnp.allclose(outl, refl, atol=1e-4, rtol=1e-4), "tiled-batch mismatch"

    print("KERNEL_OK")
</pallas_src>

<mosaic_0001>
module attributes {stable_mosaic.version = 11 : i64} {
  func.func @_kernel_single(%arg0: memref<8x16xf32, #tpu.memory_space<vmem>>, %arg1: memref<8x8xf32, #tpu.memory_space<vmem>>, %arg2: memref<176x128xf32, #tpu.memory_space<vmem>>, %arg3: memref<8x8xf32, #tpu.memory_space<vmem>>) attributes {dimension_semantics = [], scalar_prefetch = 0 : i64, scratch_operands = 0 : i64, tpu.core_type = #tpu.core_type<tc>} {
    %c0 = arith.constant 0 : index
    %c0_0 = arith.constant 0 : index
    %0 = vector.load %arg0[%c0, %c0_0] : memref<8x16xf32, #tpu.memory_space<vmem>>, vector<8x16xf32>
    %c0_1 = arith.constant 0 : index
    %c0_2 = arith.constant 0 : index
    %1 = vector.load %arg2[%c0_1, %c0_2] : memref<176x128xf32, #tpu.memory_space<vmem>>, vector<8x128xf32>
    %2 = vector.extract_strided_slice %1 {offsets = [0, 0], sizes = [1, 16], strides = [1, 1]} : vector<8x128xf32> to vector<1x16xf32>
    %3 = vector.extract_strided_slice %1 {offsets = [1, 0], sizes = [1, 16], strides = [1, 1]} : vector<8x128xf32> to vector<1x16xf32>
    %cst = arith.constant dense<0.000000e+00> : vector<16xf32>
    %4 = vector.multi_reduction <add>, %0, %cst [0] : vector<8x16xf32> to vector<16xf32>
    %5 = vector.shape_cast %4 : vector<16xf32> to vector<1x16xf32>
    %cst_3 = arith.constant 8.000000e+00 : f32
    %6 = vector.broadcast %cst_3 : f32 to vector<1x16xf32>
    %7 = arith.divf %5, %6 : vector<1x16xf32>
    %8 = vector.broadcast %7 : vector<1x16xf32> to vector<8x16xf32>
    %9 = arith.subf %0, %8 : vector<8x16xf32>
    %10 = arith.mulf %9, %9 : vector<8x16xf32>
    %cst_4 = arith.constant dense<0.000000e+00> : vector<16xf32>
    %11 = vector.multi_reduction <add>, %10, %cst_4 [0] : vector<8x16xf32> to vector<16xf32>
    %12 = vector.shape_cast %11 : vector<16xf32> to vector<1x16xf32>
    %cst_5 = arith.constant 8.000000e+00 : f32
    %13 = vector.broadcast %cst_5 : f32 to vector<1x16xf32>
    %14 = arith.divf %12, %13 : vector<1x16xf32>
    %cst_6 = arith.constant 9.99999974E-6 : f32
    %15 = vector.broadcast %cst_6 : f32 to vector<1x16xf32>
    %16 = arith.addf %14, %15 : vector<1x16xf32>
    %17 = math.rsqrt %16 : vector<1x16xf32>
    %18 = arith.mulf %17, %2 : vector<1x16xf32>
    %19 = vector.broadcast %18 : vector<1x16xf32> to vector<8x16xf32>
    %20 = arith.mulf %9, %19 : vector<8x16xf32>
    %21 = vector.broadcast %3 : vector<1x16xf32> to vector<8x16xf32>
    %22 = arith.addf %20, %21 : vector<8x16xf32>
    %c0_7 = arith.constant 0 : index
    %c0_8 = arith.constant 0 : index
    %23 = vector.load %arg1[%c0_7, %c0_8] : memref<8x8xf32, #tpu.memory_space<vmem>>, vector<8x8xf32>
    %c0_9 = arith.constant 0 : index
    %c0_10 = arith.constant 0 : index
    %24 = vector.load %arg2[%c0_9, %c0_10] : memref<176x128xf32, #tpu.memory_space<vmem>>, vector<8x128xf32>
    %25 = vector.extract_strided_slice %24 {offsets = [2, 0], sizes = [1, 128], strides = [1, 1]} : vector<8x128xf32> to vector<1x128xf32>
    %26 = vector.extract_strided_slice %24 {offsets = [3, 0], sizes = [1, 128], strides = [1, 1]} : vector<8x128xf32> to vector<1x128xf32>
    %c8 = arith.constant 8 : index
    %c0_11 = arith.constant 0 : index
    %27 = vector.load %arg2[%c8, %c0_11] : memref<176x128xf32, #tpu.memory_space<vmem>>, vector<16x128xf32>
    %cst_12 = arith.constant dense<0.000000e+00> : vector<8x128xf32>
    %28 = tpu.matmul %22, %27, %cst_12 {dimension_numbers = #tpu.dot_dimension_numbers<[1], [0], [0], [1], [0, 0, 1, 1], [], []>} : vector<8x16xf32>, vector<16x128xf32>, vector<8x128xf32> -> vector<8x128xf32>
    %29 = vector.broadcast %25 : vector<1x128xf32> to vector<8x128xf32>
    %30 = arith.addf %28, %29 : vector<8x128xf32>
    %cst_13 = arith.constant 0.000000e+00 : f32
    %31 = vector.broadcast %cst_13 : f32 to vector<8x128xf32>
    %32 = arith.maximumf %30, %31 : vector<8x128xf32>
    %c24 = arith.constant 24 : index
    %c0_14 = arith.constant 0 : index
    %33 = vector.load %arg2[%c24, %c0_14] : memref<176x128xf32, #tpu.memory_space<vmem>>, vector<128x128xf32>
    %cst_15 = arith.constant dense<0.000000e+00> : vector<8x128xf32>
    %34 = tpu.matmul %32, %33, %cst_15 {dimension_numbers = #tpu.dot_dimension_numbers<[1], [0], [0], [1], [0, 0, 1, 1], [], []>} : vector<8x128xf32>, vector<128x128xf32>, vector<8x128xf32> -> vector<8x128xf32>
    %35 = vector.broadcast %26 : vector<1x128xf32> to vector<8x128xf32>
    %36 = arith.addf %34, %35 : vector<8x128xf32>
    %cst_16 = arith.constant 0.000000e+00 : f32
    %37 = vector.broadcast %cst_16 : f32 to vector<8x128xf32>
    %38 = arith.maximumf %36, %37 : vector<8x128xf32>
    %c152 = arith.constant 152 : index
    %c0_17 = arith.constant 0 : index
    %39 = vector.load %arg2[%c152, %c0_17] : memref<176x128xf32, #tpu.memory_space<vmem>>, vector<8x128xf32>
    %c160 = arith.constant 160 : index
    %c0_18 = arith.constant 0 : index
    %40 = vector.load %arg2[%c160, %c0_18] : memref<176x128xf32, #tpu.memory_space<vmem>>, vector<8x128xf32>
    %c168 = arith.constant 168 : index
    %c0_19 = arith.constant 0 : index
    %41 = vector.load %arg2[%c168, %c0_19] : memref<176x128xf32, #tpu.memory_space<vmem>>, vector<8x128xf32>
    %42 = vector.extract_strided_slice %41 {offsets = [0, 0], sizes = [8, 1], strides = [1, 1]} : vector<8x128xf32> to vector<8x1xf32>
    %cst_20 = arith.constant dense<0.000000e+00> : vector<8x8xf32>
    %43 = tpu.matmul %39, %38, %cst_20 {dimension_numbers = #tpu.dot_dimension_numbers<[1], [1], [0], [0], [0, 0, 1, 0], [], []>} : vector<8x128xf32>, vector<8x128xf32>, vector<8x8xf32> -> vector<8x8xf32>
    %44 = vector.extract_strided_slice %40 {offsets = [0, 0], sizes = [8, 8], strides = [1, 1]} : vector<8x128xf32> to vector<8x8xf32>
    %cst_21 = arith.constant dense<0.000000e+00> : vector<8x8xf32>
    %45 = tpu.matmul %44, %23, %cst_21 {dimension_numbers = #tpu.dot_dimension_numbers<[1], [1], [0], [0], [0, 0, 1, 0], [], []>} : vector<8x8xf32>, vector<8x8xf32>, vector<8x8xf32> -> vector<8x8xf32>
    %46 = arith.addf %43, %45 : vector<8x8xf32>
    %47 = vector.broadcast %42 : vector<8x1xf32> to vector<8x8xf32>
    %48 = arith.addf %46, %47 : vector<8x8xf32>
    %c0_22 = arith.constant 0 : index
    %c0_23 = arith.constant 0 : index
    %49 = vector.load %arg3[%c0_22, %c0_23] : memref<8x8xf32, #tpu.memory_space<vmem>>, vector<8x8xf32>
    tpu.vector_store %arg3[%c0_22, %c0_23], %48 {strides = array<i32>} : memref<8x8xf32, #tpu.memory_space<vmem>>, vector<8x8xf32>,
    return
  }
}

</mosaic_0001>

<bundles_post_ra>
// kernel: tpu_custom_call.1
= control target key start
LH: loop header
LB: loop body
LE: loop exit
PB: predicated region body
PF: predicated region fallthrough
CT: control target
= control target key end

     0   :  { %8 = vsyncpa [#allocation3], 0  ;;  %s684_s0 = inlined_call_operand.hbm [shape: f32[8,16], index: 0, kind: input, shape index: {}]   ;;  %s685_s1 = inlined_call_operand.hbm [shape: f32[8,8], index: 1, kind: input, shape index: {}]   ;;  %s686_s2 = inlined_call_operand.hbm [shape: f32[176,128], index: 2, kind: input, shape index: {}]   ;;  %s687_s3 = inlined_call_operand.hbm [shape: f32[8,8], index: 3, kind: output, shape index: {}]  }
   0x1   :  { %9 = vsyncpa [#allocation6], 0 }
   0x2   :  { %10 = vsyncpa [#allocation4], 0  ;;  %s609_s12 = smov [#allocation5]   ;;  %s610_s14 = smov [#allocation2]  }
   0x3   :  { %s27_s13 = sshll.u32 %s609_s12, 4  ;;  %s17_s15 = sshll.u32 %s610_s14, 4  ;;  %s28_s13 = int_to_ptr.vmem [resolvable:$true] %s27_s13  ;;  %s18_s15 = int_to_ptr.vmem [resolvable:$true] %s17_s15 }
   0x4   :  { %s531_s16 = scalar_lea.vmem %s28_s13, 128  ;;  %p536_p1 = scmp.lt.s32.totalorder %s28_s13, %s28_s13 }
   0x5   :  { %p532_p0 = scmp.ne.s32.totalorder %s28_s13, %s531_s16  ;;  %p537_p2 = scmp.lt.s32.totalorder %s531_s16, %s531_s16 }
   0x7   :  { %p538_p3 = por %p537_p2, %p536_p1 }
   0x9   :  { %p539_p4 = pnand %p538_p3, %p532_p0 }
   0xb   :  { %542 = shalt.err (!%p539_p4)
}
   0xc   :  { %30 = dma.hbm_to_vmem [thread:$0]  %s685_s1, 128, %s28_s13, [#allocation6]  }
   0xd   :  { %s551_s19 = scalar_lea.vmem %s18_s15, 128  ;;  %p556_p6 = scmp.lt.s32.totalorder %s18_s15, %s18_s15 }
   0xe   :  { %p552_p5 = scmp.ne.s32.totalorder %s18_s15, %s551_s19  ;;  %p557_p7 = scmp.lt.s32.totalorder %s551_s19, %s551_s19 }
  0x10   :  { %p558_p8 = por %p557_p7, %p556_p6 }
  0x12   :  { %p559_p9 = pnand %p558_p8, %p552_p5 }
  0x14   :  { %562 = shalt.err (!%p559_p9)
}
  0x15   :  { %20 = dma.hbm_to_vmem [thread:$0]  %s684_s0, 128, %s18_s15, [#allocation3]  }
  0x16   :  { %s611_s22 = smov [#allocation7]  }
  0x17   :  { %s36_s23 = sshll.u32 %s611_s22, 4  ;;  %s37_s23 = int_to_ptr.vmem [resolvable:$true] %s36_s23 }
  0x18   :  { %s571_s24 = scalar_lea.vmem %s37_s23, 2816  ;;  %p576_p11 = scmp.lt.s32.totalorder %s37_s23, %s37_s23 }
  0x19   :  { %p572_p10 = scmp.ne.s32.totalorder %s37_s23, %s571_s24  ;;  %p577_p12 = scmp.lt.s32.totalorder %s571_s24, %s571_s24 }
  0x1b   :  { %p578_p13 = por %p577_p12, %p576_p11 }
  0x1d   :  { %p579_p0 = pnand %p578_p13, %p572_p10 }
  0x1f   :  { %582 = shalt.err (!%p579_p0)
}
  0x20   :  { %s612_s1 = smov 128   ;;  %s613_s25 = smov 8  }
  0x21   :  { %42 = dma.hbm_to_vmem [thread:$0]  %s686_s2, 2816, %s37_s23, [#allocation6], %s612_s1, %s612_s1, %s613_s25  }
  0x22   :  { %603 = dma.done.wait [#allocation3], 128  }
  0x23   :  { %604 = vsyncadd [#allocation3], 4294967168 }
  0x24   :  { %605 = dma.done.wait [#allocation6], 2944  }
  0x25   :  { %606 = vsyncadd [#allocation6], 4294964352  ;;  %v614_v0 = vmov 0.0   ;;  %vm615_vm0 = vmmov 0   ;;  %vm54_vm1 = vcmask 130048   ;;  %v89_v1 = vld [vmem:[#allocation7 + $0x10] sm:$0xff]  ;;  %v77_v36 = vlaneseq }
  0x26   :  { %459 = vmatprep.subr.mxu0 %v614_v0  ;;  %463 = vmatprep.mubr.msk.f32.mxu0 %vm615_vm0, %v614_v0  ;;  %v88_v2 = vld [vmem:[#allocation7 + $0x8] sm:$0xff]  ;;  %v52_v3 = vld [vmem:[#allocation2] sm:$0xff]  ;;  %v181_v8 = vld [vmem:[#allocation7 + $0x80] sm:$0xff]  ;;  %vm262_vm2 = vcmask 64512   ;;  %v616_v59 = vmov 0   ;;  %s617_s0 = smov [#allocation8]  }
  0x27   :  { %466 = vmatprep.subr.mxu1 %v614_v0  ;;  %498 = vmatprep.mubr.msk.f32.mxu1 %vm615_vm0, %v614_v0  ;;  %v55_v4 = vsel %vm54_vm1, %v52_v3, 0.0  ;;  %v183_v5 = vld [vmem:[#allocation7 + $0x90] sm:$0xff]  ;;  %v182_v6 = vld [vmem:[#allocation7 + $0x88] sm:$0xff]  ;;  %v180_v10 = vld [vmem:[#allocation7 + $0x78] sm:$0xff]  ;;  %v78_v37 = vshrl.u32 %v77_v36, 7  ;;  %s422_s2 = sshll.u32 %s617_s0, 4  ;;  %s423_s2 = int_to_ptr.vmem [resolvable:$true] %s422_s2 }
  0x28   :  { %460 = vmatpush3.msra.mxu0 %v89_v1  ;;  %v56_v7 = vrot.slane %v55_v4, 4  ;;  %467 = vmatpush3.msra.mxu1 %v183_v5  ;;  %v179_v12 = vld [vmem:[#allocation7 + $0x70] sm:$0xff]  ;;  %v178_v14 = vld [vmem:[#allocation7 + $0x68] sm:$0xff]  ;;  %v177_v16 = vld [vmem:[#allocation7 + $0x60] sm:$0xff]  ;;  %s583_s28 = scalar_lea.vmem %s423_s2, 128  ;;  %p588_p2 = scmp.lt.s32.totalorder %s423_s2, %s423_s2 }
  0x29   :  { %461 = vmatprep.subr.mxu0 %v614_v0  ;;  %468 = vmatprep.subr.mxu1 %v614_v0  ;;  %v176_v18 = vld [vmem:[#allocation7 + $0x58] sm:$0xff]  ;;  %v175_v20 = vld [vmem:[#allocation7 + $0x50] sm:$0xff]  ;;  %v174_v22 = vld [vmem:[#allocation7 + $0x48] sm:$0xff]  ;;  %v79_v39 = vsub.s32 0, %v78_v37  ;;  %v84_v40 = vsub.s32 1, %v78_v37  ;;  %v92_v50 = vsub.s32 2, %v78_v37  ;;  %p584_p1 = scmp.ne.s32.totalorder %s423_s2, %s583_s28  ;;  %p589_p3 = scmp.lt.s32.totalorder %s583_s28, %s583_s28 }
  0x2a   :  { %462 = vmatpush3.msra.mxu0 %v88_v2  ;;  %v57_v9 = vadd.f32 %v56_v7, %v55_v4  ;;  %469 = vmatpush3.msra.mxu1 %v182_v6  ;;  %v173_v24 = vld [vmem:[#allocation7 + $0x40] sm:$0xff]  ;;  %v172_v27 = vld [vmem:[#allocation7 + $0x38] sm:$0xff]  ;;  %v171_v29 = vld [vmem:[#allocation7 + $0x30] sm:$0xff]  ;;  %v186_v60 = vsub.s32 3, %v78_v37 }
  0x2b   :  { %501 = vmatprep.subr.mxu0 %v614_v0  ;;  %470 = vmatprep.subr.mxu1 %v614_v0  ;;  %v53_v38 = vld [vmem:[#allocation7] sm:$0xff]  ;;  %v170_v47 = vld [vmem:[#allocation7 + $0x28] sm:$0xff]  ;;  %v168_v49 = vld [vmem:[#allocation7 + $0x18] sm:$0xff]  ;;  %p590_p4 = por %p589_p3, %p588_p2 }
  0x2c   :  { %v58_v11 = vrot.slane %v57_v9, 2  ;;  %471 = vmatpush3.msra.mxu1 %v181_v8  ;;  %v85_v44 = vrot.slane %v53_v38, %v84_v40  ;;  %v169_v48 = vld [vmem:[#allocation7 + $0x20] sm:$0xff]  ;;  %v93_v51 = vrot.slane %v53_v38, %v92_v50  ;;  %v87_v56 = vld [vmem:[#allocation5] sm:$0xff]  ;;  %v261_v58 = vld [vmem:[#allocation7 + $0xa8] sm:$0xff]  ;;  %520 = vset.pattern.permute.xlu0 %v616_v59  ;;  %v187_v61 = vrot.slane %v53_v38, %v186_v60 }
  0x2d   :  { %472 = vmatprep.subr.mxu1 %v614_v0  ;;  %v260_v57 = vld [vmem:[#allocation7 + $0xa0] sm:$0xff]  ;;  %411 = vperm.xlu0 %520, %v261_v58   ;;  %p591_p5 = pnand %p590_p4, %p584_p1 }
  0x2e   :  { %v59_v13 = vadd.f32 %v58_v11, %v57_v9  ;;  %473 = vmatpush3.msra.mxu1 %v180_v10 }
  0x2f   :  { %474 = vmatprep.subr.mxu1 %v614_v0 }
  0x30   :  { %v60_v15 = vrot.slane %v59_v13, 1  ;;  %475 = vmatpush3.msra.mxu1 %v179_v12 }
  0x31   :  { %476 = vmatprep.subr.mxu1 %v614_v0 }
  0x32   :  { %v61_v17 = vadd.f32 %v60_v15, %v59_v13  ;;  %477 = vmatpush3.msra.mxu1 %v178_v14 }
  0x33   :  { %478 = vmatprep.subr.mxu1 %v614_v0 }
  0x34   :  { %v63_v19 = vmul.f32 0.125, %v61_v17  ;;  %479 = vmatpush3.msra.mxu1 %v177_v16 }
  0x35   :  { %480 = vmatprep.subr.mxu1 %v614_v0 }
  0x36   :  { %v64_v21 = vsub.f32 %v52_v3, %v63_v19  ;;  %481 = vmatpush3.msra.mxu1 %v176_v18  ;;  %v259_v3 = vld [vmem:[#allocation7 + $0x98] sm:$0xff] }
  0x37   :  { %482 = vmatprep.subr.mxu1 %v614_v0 }
  0x38   :  { %v65_v23 = vmul.f32 %v64_v21, %v64_v21  ;;  %483 = vmatpush3.msra.mxu1 %v175_v20 }
  0x39   :  { %484 = vmatprep.subr.mxu1 %v614_v0 }
  0x3a   :  { %v66_v25 = vsel %vm54_vm1, %v65_v23, 0.0  ;;  %485 = vmatpush3.msra.mxu1 %v174_v22 }
  0x3b   :  { %v67_v26 = vrot.slane %v66_v25, 4  ;;  %486 = vmatprep.subr.mxu1 %v614_v0 }
  0x3c   :  { %487 = vmatpush3.msra.mxu1 %v173_v24 }
  0x3d   :  { %v68_v28 = vadd.f32 %v67_v26, %v66_v25  ;;  %488 = vmatprep.subr.mxu1 %v614_v0 }
  0x3e   :  { %489 = vmatpush3.msra.mxu1 %v172_v27 }
  0x3f   :  { %v69_v30 = vrot.slane %v68_v28, 2  ;;  %490 = vmatprep.subr.mxu1 %v614_v0 }
  0x40   :  { %491 = vmatpush3.msra.mxu1 %v171_v29 }
  0x41   :  { %v70_v31 = vadd.f32 %v69_v30, %v68_v28  ;;  %492 = vmatprep.subr.mxu1 %v614_v0 }
  0x42   :  { %493 = vmatpush3.msra.mxu1 %v170_v47 }
  0x43   :  { %v71_v32 = vrot.slane %v70_v31, 1  ;;  %494 = vmatprep.subr.mxu1 %v614_v0 }
  0x44   :  { %495 = vmatpush3.msra.mxu1 %v169_v48 }
  0x45   :  { %v72_v33 = vadd.f32 %v71_v32, %v70_v31  ;;  %496 = vmatprep.subr.mxu1 %v614_v0 }
  0x46   :  { %497 = vmatpush3.msra.mxu1 %v168_v49 }
  0x47   :  { %v73_v34 = vmul.f32 0.125, %v72_v33 }
  0x49   :  { %v74_v35 = vadd.f32 1e-05, %v73_v34 }
  0x4b   :  { %521 = vrsqrt.f32 %v74_v35 }
  0x58   :  { %v522_v41 = vpop.eup %521 }
  0x59   :  { %v76_v42 = vmul.f32 %v522_v41, %v53_v38 }
  0x5b   :  { %v80_v43 = vrot.slane %v76_v42, %v79_v39 }
  0x5d   :  { %v81_v45 = vmul.f32 %v80_v43, %v64_v21 }
  0x5f   :  { %v86_v46 = vadd.f32 %v85_v44, %v81_v45 }
  0x61   :  { %464 = vmatmul.mubr.msk.f32.vlgmr.msra.gmra.mxu0 %vm54_vm1, %v86_v46 }
  0x62   :  { %503 = vmatprep.mubr.msk.f32.mxu0 %vm615_vm0, %v614_v0  ;;  %502 = vmatpush3.xpose.msk.msra.mxu0 %vm262_vm2, %v87_v56 }
  0x63   :  { %506 = vmatprep.subr.mxu0 %v614_v0 }
  0x65   :  { %504 = vmatmul.mubr.msk.f32.vlgmr.msra.gmra.mxu0 %vm262_vm2, %v260_v57 }
  0x66   :  { %508 = vmatprep.mubr.msk.f32.mxu0 %vm615_vm0, %v614_v0 }
  0xa8   :  { %v412_v7 = vpop.permute.xlu0 %411 }
 0x121   :  { %v163_v52 = vpop.f32.mrf.mxu0 }
 0x122   :  { %v164_v53 = vadd.f32 %v163_v52, %v93_v51 }
 0x123   :  { %v465_v54 = vpop.f32.mrf.mxu0 }
 0x124   :  { %v167_v55 = vmax.f32 %v164_v53, 0.0 }
 0x125   :  { %v335_v4 = vpop.f32.mrf.mxu0 }
 0x126   :  { %499 = vmatmul.mubr.f32.vlgmr.msra.gmra.mxu1 %v167_v55 }
 0x127   :  { %v505_v5 = vpop.f32.mrf.mxu0 }
 0x1e6   :  { %v254_v62 = vpop.f32.mrf.mxu1 }
 0x1e7   :  { %v255_v63 = vadd.f32 %v254_v62, %v187_v61 }
 0x1e8   :  { %v500_v1 = vpop.f32.mrf.mxu1 }
 0x1e9   :  { %v258_v2 = vmax.f32 %v255_v63, 0.0 }
 0x1eb   :  { %507 = vmatpush3.xpose.msra.mxu0 %v258_v2 }
 0x1ee   :  { %509 = vmatmul.mubr.f32.vlgmr.msra.gmra.mxu0 %v259_v3 }
 0x2ae   :  { %v405_v6 = vpop.f32.mrf.mxu0 }
 0x2af   :  { %v406_v0 = vadd.f32 %v405_v6, %v335_v4 }
 0x2b0   :  { %v510_v8 = vpop.f32.mrf.mxu0 }
 0x2b1   :  { %v414_v9 = vadd.f32 %v412_v7, %v406_v0 }
 0x2b3   :  { %415 = vst.msk [vmem:[#allocation8] sm:$0xff] %vm262_vm2, %v414_v9 }
 0x2b4   :  { %594 = shalt.err (!%p591_p5)
}
 0x2b5   :  { %425 = dma.vmem_to_hbm [thread:$0]  %s423_s2, 128, %s687_s3, [#allocation4]  }
 0x2b6   :  { %607 = dma.done.wait [#allocation4], 128  }
 0x2b7   :  { %608 = vsyncadd [#allocation4], 4294967168 }
 0x2b8   :  { %429 = vsyncpa [#allocation3], 1 }
 0x2b9   :  { %430 = vsyncpa [#allocation6], 1 }
 0x2ba   :  { %431 = vsyncpa [#allocation4], 1 }

</bundles_post_ra>
